<compile_context>
chip_gen: v7x
topology: tpu7x:2x2x1
jax: 0.10.0
libtpu: 0.0.40
codegen_flags: <defaults>
</compile_context>

<pallas_src>
import functools

import numpy as np
import jax
import jax.numpy as jnp
from jax import lax
from jax.experimental import pallas as pl
from jax.experimental.pallas import tpu as pltpu

_VMEM_LIMIT = 32 * 1024 * 1024  # explicit scoped-VMEM budget (v5e default is 16 MiB)


# ----------------------------------------------------------------------------
# small helpers
# ----------------------------------------------------------------------------
def _round_up(x, m):
    return (x + m - 1) // m * m


def _pad_to(a, shape):
    pads = [(0, s - d) for d, s in zip(a.shape, shape)]
    return jnp.pad(a, pads)


def _pick_tile(dim, max_tile, granule):
    """Largest divisor of `dim` that is <= max_tile and a multiple of granule."""
    if dim <= max_tile:
        return dim
    for t in range(max_tile, granule - 1, -granule):
        if dim % t == 0:
            return t
    return granule  # dim is always a multiple of granule by construction


# ----------------------------------------------------------------------------
# Kernel 1/3: fused linear  y = x @ W^T + b   (W pre-transposed, cast to the
# compute dtype; f32 accumulation; bias add + store in f32).
# 2-D grid over (M, N) so neither the activations nor the weights have to be
# fully resident in VMEM; both axes are independent -> "parallel".
# ----------------------------------------------------------------------------
def _linear_kernel(x_ref, w_ref, b_ref, o_ref, *, cdt):
    acc = jnp.dot(x_ref[...].astype(cdt), w_ref[...],
                  preferred_element_type=jnp.float32)
    o_ref[...] = (acc + b_ref[...]).astype(o_ref.dtype)


def linear_pallas(x, w_t, b, *, compute_dtype, max_tm=512, max_tn=512):
    """x: (M, K), w_t: (K, N) in compute dtype, b: (1, N) f32 -> (M, N) f32."""
    M, K = x.shape
    N = w_t.shape[1]
    tm = _pick_tile(M, max_tm, 64)    # M is always a multiple of 64 (Bp*Lp, both %8)
    tn = _pick_tile(N, max_tn, 128)   # N is always a multiple of 128
    return pl.pallas_call(
        functools.partial(_linear_kernel, cdt=compute_dtype),
        out_shape=jax.ShapeDtypeStruct((M, N), jnp.float32),
        grid_spec=pltpu.PrefetchScalarGridSpec(
            num_scalar_prefetch=0,
            grid=(M // tm, N // tn),
            in_specs=[
                pl.BlockSpec((tm, K), lambda i, j: (i, 0)),   # activation tile
                pl.BlockSpec((K, tn), lambda i, j: (0, j)),   # weight tile (streams N)
                pl.BlockSpec((1, tn), lambda i, j: (0, j)),   # bias tile
            ],
            out_specs=pl.BlockSpec((tm, tn), lambda i, j: (i, j)),
        ),
        compiler_params=pltpu.CompilerParams(
            dimension_semantics=("parallel", "parallel"),
            vmem_limit_bytes=_VMEM_LIMIT,
        ),
    )(x, w_t, b)


# ----------------------------------------------------------------------------
# Kernel 2/3: the serial RNN recurrence, time-chunked.
#   h_t = tanh(xp[t] + h_{t-1} @ W_hh^T)
# xp already contains x_t @ W_ih^T + b_ih + b_hh (precomputed in parallel).
# Grid = (batch_tiles [parallel], time_chunks [arbitrary]); hidden state is
# carried across chunks in a VMEM scratch and in vregs within a chunk.
# ----------------------------------------------------------------------------
def _rnn_recurrence_kernel(xp_ref,    # (Tc, Bt, Hp) f32
                           whh_ref,   # (Hp, Hp)      = W_hh^T (compute dtype)
                           hs_ref,    # (Tc, Bt, Hp) f32 output hidden states
                           h_ref,     # (Bt, Hp) f32 VMEM scratch (carried)
                           *, cdt):
    @pl.when(pl.program_id(1) == 0)          # first time-chunk of this batch tile
    def _():
        h_ref[...] = jnp.zeros_like(h_ref)   # h0 = 0

    tc = xp_ref.shape[0]

    def step(tau, h_prev):
        h_t = jnp.tanh(xp_ref[tau]
                       + jnp.dot(h_prev.astype(cdt), whh_ref[...],
                                 preferred_element_type=jnp.float32))
        hs_ref[tau] = h_t
        return h_t

    h_ref[...] = lax.fori_loop(0, tc, step, h_ref[...], unroll=(tc <= 8))


def rnn_recurrence_pallas(xp, whh_t, *, compute_dtype, bt, tc):
    """xp: (Lp, Bp, Hp) f32 time-major, whh_t: (Hp, Hp) -> hidden states (Lp, Bp, Hp)."""
    Lp, Bp, Hp = xp.shape
    return pl.pallas_call(
        functools.partial(_rnn_recurrence_kernel, cdt=compute_dtype),
        out_shape=jax.ShapeDtypeStruct((Lp, Bp, Hp), jnp.float32),
        grid_spec=pltpu.PrefetchScalarGridSpec(
            num_scalar_prefetch=0,
            grid=(Bp // bt, Lp // tc),        # batch tiles outer, time chunks inner
            in_specs=[
                pl.BlockSpec((tc, bt, Hp), lambda b, t: (t, b, 0)),
                pl.BlockSpec((Hp, Hp), lambda b, t: (0, 0)),   # W_hh resident
            ],
            out_specs=pl.BlockSpec((tc, bt, Hp), lambda b, t: (t, b, 0)),
            scratch_shapes=[pltpu.VMEM((bt, Hp), jnp.float32)],  # carried hidden state
        ),
        compiler_params=pltpu.CompilerParams(
            dimension_semantics=("parallel", "arbitrary"),   # time is sequential
            vmem_limit_bytes=_VMEM_LIMIT,
        ),
    )(xp, whh_t)


# ----------------------------------------------------------------------------
# Parameter construction (deterministic, mirrors LanguageModel.__init__ shapes)
# ----------------------------------------------------------------------------
def init_params(key, vocab_size, embed_size, hidden_size, pad_id):
    ks = jax.random.split(key, 7)
    emb = 0.1 * jax.random.normal(ks[0], (vocab_size, embed_size), jnp.float32)
    emb = emb.at[pad_id].set(0.0)  # nn.Embedding padding_idx row is zero
    return {
        "embedding": emb,                                                   # (V, E)
        "w_ih": 0.1 * jax.random.normal(ks[1], (hidden_size, embed_size)),  # (H, E)
        "w_hh": 0.1 * jax.random.normal(ks[2], (hidden_size, hidden_size)), # (H, H)
        "b_ih": 0.1 * jax.random.normal(ks[3], (hidden_size,)),
        "b_hh": 0.1 * jax.random.normal(ks[4], (hidden_size,)),
        "w_out": 0.1 * jax.random.normal(ks[5], (vocab_size, hidden_size)), # (V, H)
        "b_out": 0.1 * jax.random.normal(ks[6], (vocab_size,)),
    }


def prepare_kernel_params(params, compute_dtype=jnp.bfloat16):
    """One-time: pre-transpose weights, fold biases, pad E/H to 128 and V to 512,
    store streamed weights + embedding in the MXU compute dtype (bf16 by default)."""
    V, E = params["embedding"].shape
    H = params["w_hh"].shape[0]
    Ep, Hp = _round_up(E, 128), _round_up(H, 128)
    Vp = _round_up(V, 512)   # big lane-dense tiles for the vocab projection
    cdt = compute_dtype
    return {
        "embedding": _pad_to(params["embedding"], (V, Ep)).astype(cdt),     # (V, Ep)
        "wih_t": _pad_to(params["w_ih"].T, (Ep, Hp)).astype(cdt),           # (Ep, Hp)
        "whh_t": _pad_to(params["w_hh"].T, (Hp, Hp)).astype(cdt),           # (Hp, Hp)
        "bias": _pad_to((params["b_ih"] + params["b_hh"]).reshape(1, -1),
                        (1, Hp)).astype(jnp.float32),                       # folded bias
        "wout_t": _pad_to(params["w_out"].T, (Hp, Vp)).astype(cdt),         # (Hp, Vp)
        "b_out": _pad_to(params["b_out"].reshape(1, -1),
                         (1, Vp)).astype(jnp.float32),                      # (1, Vp)
        "dims": (E, H, V, Ep, Hp, Vp),
        "compute_dtype": cdt,
    }


# ----------------------------------------------------------------------------
# Forward pass (matches LanguageModel.forward semantics)
# ----------------------------------------------------------------------------
def language_model_forward(kparams, indices, lengths):
    """indices: (B, L) int32, lengths: (B,) host ints. Returns (B, max(lengths), V)."""
    E, H, V, Ep, Hp, Vp = kparams["dims"]
    cdt = kparams["compute_dtype"]

    # NOTE: mirrors `indices[:, :max(lengths)]` -> lengths must be concrete host
    # values (data-dependent output shape; do not jit over traced lengths).
    max_len = int(np.max(np.asarray(lengths)))
    idx = jnp.asarray(indices)[:, :max_len]                     # (B, L)
    B, L = idx.shape

    # Static padding so every kernel block is (8,128)-friendly and stores are dense.
    Bp = _round_up(B, 8)
    Lp = _round_up(L, 8)
    tc = _pick_tile(Lp, 64, 8)                                  # time-chunk size
    # Split the batch across v7x's two TensorCores when it is large enough.
    bt = Bp // 2 if (Bp >= 16 and (Bp // 2) % 8 == 0) else Bp
    idx_p = jnp.pad(idx.astype(jnp.int32), ((0, Bp - B), (0, Lp - L)))
    M = Lp * Bp

    # Embedding gather directly in time-major order (transpose the tiny int index
    # matrix, not activations).  Table lives in bf16 -> half the HBM round-trip.
    x_tm = jnp.take(kparams["embedding"], idx_p.T, axis=0)      # (Lp, Bp, Ep)

    # 1) Input projection hoisted out of the recurrence (M = Lp*Bp MXU rows).
    xp = linear_pallas(x_tm.reshape(M, Ep), kparams["wih_t"], kparams["bias"],
                       compute_dtype=cdt)
    xp = xp.reshape(Lp, Bp, Hp)

    # 2) Serial recurrence: time-chunked grid, hidden state in VMEM scratch,
    #    xp prefetch / hs writeback overlapped with the serial time loop.
    hs = rnn_recurrence_pallas(xp, kparams["whh_t"], compute_dtype=cdt, bt=bt, tc=tc)

    # 3) Output projection.  Flip the SMALL hidden-state tensor (L*B*H) to
    #    batch-major so the big logits tensor (L*B*V) is produced directly in
    #    (B, L, V) layout -- no transpose pass over the largest tensor.
    hs_bt = jnp.transpose(hs, (1, 0, 2)).astype(cdt)            # (Bp, Lp, Hp)
    logits = linear_pallas(hs_bt.reshape(M, Hp), kparams["wout_t"], kparams["b_out"],
                           compute_dtype=cdt)
    logits = logits.reshape(Bp, Lp, Vp)[:B, :L, :V]             # drop batch/time/vocab pad
    return logits                                               # (B, max_len, V) f32


# ----------------------------------------------------------------------------
# Pure-JAX reference (for correctness check)
# ----------------------------------------------------------------------------
def language_model_forward_ref(params, indices, lengths):
    max_len = int(np.max(np.asarray(lengths)))
    idx = indices[:, :max_len]
    emb = jnp.take(params["embedding"], idx, axis=0)            # (B, L, E)
    x_tm = jnp.transpose(emb, (1, 0, 2))                        # (L, B, E)
    B = idx.shape[0]
    H = params["w_hh"].shape[0]

    def step(h, x_t):
        h_new = jnp.tanh(x_t @ params["w_ih"].T + params["b_ih"]
                         + h @ params["w_hh"].T + params["b_hh"])
        return h_new, h_new

    _, hs = jax.lax.scan(step, jnp.zeros((B, H), jnp.float32), x_tm)
    logits = hs @ params["w_out"].T + params["b_out"]           # (L, B, V)
    return jnp.transpose(logits, (1, 0, 2))


if __name__ == "__main__":
    # Small shapes consistent with the module's forward.
    batch = 2
    seq = 10
    vocab_size = 64
    embed_size = 32
    hidden_size = 32
    pad_id = 0

    key = jax.random.PRNGKey(0)
    k_par, k_idx = jax.random.split(key)

    params = init_params(k_par, vocab_size, embed_size, hidden_size, pad_id)
    indices = jax.random.randint(k_idx, (batch, seq), 0, vocab_size, jnp.int32)
    lengths = np.array([8, 5], dtype=np.int32)   # max(lengths) = 8 -> Lmax = 8

    expected = language_model_forward_ref(params, indices, lengths)

    # Exact-precision path (f32 operands): tight numerical check.
    kparams_f32 = prepare_kernel_params(params, compute_dtype=jnp.float32)
    logits_f32 = jax.block_until_ready(
        language_model_forward(kparams_f32, indices, lengths))
    np.testing.assert_allclose(np.asarray(logits_f32), np.asarray(expected),
                               rtol=1e-5, atol=1e-5)

    # Performance path (bf16 weights / MXU operands, f32 accumulation): relaxed check.
    kparams_bf16 = prepare_kernel_params(params, compute_dtype=jnp.bfloat16)
    logits_bf16 = jax.block_until_ready(
        language_model_forward(kparams_bf16, indices, lengths))
    np.testing.assert_allclose(np.asarray(logits_bf16), np.asarray(expected),
                               rtol=2e-2, atol=2e-2)

    assert logits_f32.shape == (batch, int(np.max(lengths)), vocab_size)
    assert logits_bf16.shape == (batch, int(np.max(lengths)), vocab_size)

    print("KERNEL_OK")
</pallas_src>

<mosaic_0001>
module attributes {stable_mosaic.version = 11 : i64} {
  func.func @_linear_kernel(%arg0: i32, %arg1: i32, %arg2: memref<64x128xf32, #tpu.memory_space<vmem>>, %arg3: memref<128x128xf32, #tpu.memory_space<vmem>>, %arg4: memref<1x128xf32, #tpu.memory_space<vmem>>, %arg5: memref<64x128xf32, #tpu.memory_space<vmem>>) attributes {dimension_semantics = [#tpu.dimension_semantics<parallel>, #tpu.dimension_semantics<parallel>], iteration_bounds = array<i64: 1, 1>, scalar_prefetch = 0 : i64, scratch_operands = 0 : i64, tpu.core_type = #tpu.core_type<tc>, window_params = [{transform_indices = @transform_0, window_bounds = array<i64: 64, 128>}, {transform_indices = @transform_1, window_bounds = array<i64: 128, 128>}, {transform_indices = @transform_2, window_bounds = array<i64: 1, 128>}, {transform_indices = @transform_3, window_bounds = array<i64: 64, 128>}]} {
    %c0 = arith.constant 0 : index
    %c0_0 = arith.constant 0 : index
    %0 = vector.load %arg2[%c0, %c0_0] : memref<64x128xf32, #tpu.memory_space<vmem>>, vector<64x128xf32>
    %c0_1 = arith.constant 0 : index
    %c0_2 = arith.constant 0 : index
    %1 = vector.load %arg3[%c0_1, %c0_2] : memref<128x128xf32, #tpu.memory_space<vmem>>, vector<128x128xf32>
    %cst = arith.constant dense<0.000000e+00> : vector<64x128xf32>
    %2 = tpu.matmul %0, %1, %cst {dimension_numbers = #tpu.dot_dimension_numbers<[1], [0], [0], [1], [0, 0, 1, 1], [], []>} : vector<64x128xf32>, vector<128x128xf32>, vector<64x128xf32> -> vector<64x128xf32>
    %c0_3 = arith.constant 0 : index
    %c0_4 = arith.constant 0 : index
    %3 = vector.load %arg4[%c0_3, %c0_4] : memref<1x128xf32, #tpu.memory_space<vmem>>, vector<1x128xf32>
    %4 = vector.broadcast %3 : vector<1x128xf32> to vector<64x128xf32>
    %5 = arith.addf %2, %4 : vector<64x128xf32>
    %c0_5 = arith.constant 0 : index
    %c0_6 = arith.constant 0 : index
    %6 = vector.load %arg5[%c0_5, %c0_6] : memref<64x128xf32, #tpu.memory_space<vmem>>, vector<64x128xf32>
    tpu.vector_store %arg5[%c0_5, %c0_6], %5 {strides = array<i32>} : memref<64x128xf32, #tpu.memory_space<vmem>>, vector<64x128xf32>,
    return
  }
  func.func @transform_0(%arg0: i32, %arg1: i32) -> (i32, i32) {
    %c0_i32 = arith.constant 0 : i32
    %c0_i32_0 = arith.constant 0 : i32
    return %arg0, %c0_i32 : i32, i32
  }
  func.func @transform_1(%arg0: i32, %arg1: i32) -> (i32, i32) {
    %c0_i32 = arith.constant 0 : i32
    %c0_i32_0 = arith.constant 0 : i32
    return %c0_i32, %arg1 : i32, i32
  }
  func.func @transform_2(%arg0: i32, %arg1: i32) -> (i32, i32) {
    %c0_i32 = arith.constant 0 : i32
    %c0_i32_0 = arith.constant 0 : i32
    return %c0_i32, %arg1 : i32, i32
  }
  func.func @transform_3(%arg0: i32, %arg1: i32) -> (i32, i32) {
    %c0_i32 = arith.constant 0 : i32
    return %arg0, %arg1 : i32, i32
  }
}

</mosaic_0001>

<bundles_post_ra>
// kernel: tpu_custom_call.1
= control target key start
LH: loop header
LB: loop body
LE: loop exit
PB: predicated region body
PF: predicated region fallthrough
CT: control target
= control target key end

     0   :  { %8 = vsyncpa [#allocation3], 0  ;;  %s472_s0 = inlined_call_operand.hbm [shape: f32[64,128], index: 0, kind: input, shape index: {}]   ;;  %s473_s1 = inlined_call_operand.hbm [shape: f32[128,128], index: 1, kind: input, shape index: {}]   ;;  %s474_s2 = inlined_call_operand.vmem [shape: f32[1,128], index: 2, kind: input, shape index: {}]   ;;  %s475_s3 = inlined_call_operand.hbm [shape: f32[64,128], index: 3, kind: output, shape index: {}]  }
   0x1   :  { %9 = vsyncpa [#allocation6], 0 }
   0x2   :  { %10 = vsyncpa [#allocation4], 0  ;;  %s399_s12 = smov [#allocation2]   ;;  %s327_s16 = scalar_lea.hbm %s472_s0, 1024 }
   0x3   :  { %s16_s13 = sshll.u32 %s399_s12, 4  ;;  %p328_p0 = scmp.ne.s32.totalorder %s472_s0, %s327_s16  ;;  %s17_s13 = int_to_ptr.vmem [resolvable:$true] %s16_s13 }
   0x4   :  { %p331_p1 = scmp.lt.u32.totalorder %s327_s16, %s472_s0 }
   0x6   :  { %p333_p2 = pnand %p331_p1, %p328_p0 }
   0x8   :  { %336 = shalt.err (!%p333_p2)
}
   0x9   :  { %s337_s21 = scalar_lea.vmem %s17_s13, 1024  ;;  %p342_p4 = scmp.lt.s32.totalorder %s17_s13, %s17_s13 }
   0xa   :  { %p338_p3 = scmp.ne.s32.totalorder %s17_s13, %s337_s21  ;;  %p343_p5 = scmp.lt.s32.totalorder %s337_s21, %s337_s21 }
   0xc   :  { %p344_p6 = por %p343_p5, %p342_p4 }
   0xe   :  { %p345_p7 = pnand %p344_p6, %p338_p3 }
  0x10   :  { %348 = shalt.err (!%p345_p7)
}
  0x11   :  { %s400_s22 = smov 128   ;;  %s401_s23 = smov 8  }
  0x12   :  { %22 = dma.hbm_to_vmem [thread:$0]  %s472_s0, 1024, %s17_s13, [#allocation3], %s400_s22, %s400_s22, %s401_s23  }
  0x13   :  { %s402_s26 = smov [#allocation5]   ;;  %s349_s30 = scalar_lea.hbm %s473_s1, 2048 }
  0x14   :  { %s28_s27 = sshll.u32 %s402_s26, 4  ;;  %p350_p8 = scmp.ne.s32.totalorder %s473_s1, %s349_s30  ;;  %s29_s27 = int_to_ptr.vmem [resolvable:$true] %s28_s27 }
  0x15   :  { %p353_p9 = scmp.lt.u32.totalorder %s349_s30, %s473_s1 }
  0x17   :  { %p355_p10 = pnand %p353_p9, %p350_p8 }
  0x19   :  { %358 = shalt.err (!%p355_p10)
}
  0x1a   :  { %s359_s8 = scalar_lea.vmem %s29_s27, 2048  ;;  %p364_p12 = scmp.lt.s32.totalorder %s29_s27, %s29_s27 }
  0x1b   :  { %p360_p11 = scmp.ne.s32.totalorder %s29_s27, %s359_s8  ;;  %p365_p13 = scmp.lt.s32.totalorder %s359_s8, %s359_s8 }
  0x1d   :  { %p366_p0 = por %p365_p13, %p364_p12 }
  0x1f   :  { %p367_p1 = pnand %p366_p0, %p360_p11 }
  0x21   :  { %370 = shalt.err (!%p367_p1)
}
  0x22   :  { %34 = dma.hbm_to_vmem [thread:$0]  %s473_s1, 2048, %s29_s27, [#allocation6], %s400_s22, %s400_s22, %s401_s23  }
  0x23   :  { %393 = dma.done.wait [#allocation3], 1024  }
  0x24   :  { %394 = vsyncadd [#allocation3], 4294966272 }
  0x25   :  { %395 = dma.done.wait [#allocation6], 2048  }
  0x26   :  { %396 = vsyncadd [#allocation6], 4294965248  ;;  %v51_v0 = vld [vmem:[#allocation5] sm:$0xff]  ;;  %v52_v1 = vld [vmem:[#allocation5 + $0x8] sm:$0xff]  ;;  %s403_s11 = smov [#allocation7]  }
  0x27   :  { %v53_v2 = vld [vmem:[#allocation5 + $0x10] sm:$0xff]  ;;  %v274_v3 = vpack.c.bf16 %v52_v1, %v51_v0  ;;  %v54_v4 = vld [vmem:[#allocation5 + $0x18] sm:$0xff]  ;;  %v55_v6 = vld [vmem:[#allocation5 + $0x20] sm:$0xff]  ;;  %s192_s12 = sshll.u32 %s403_s11, 4  ;;  %s193_s12 = int_to_ptr.vmem [resolvable:$true] %s192_s12 }
  0x28   :  { %v278_v5 = vpack.c.bf16 %v54_v4, %v53_v2  ;;  %v56_v7 = vld [vmem:[#allocation5 + $0x28] sm:$0xff]  ;;  %v43_v9 = vld [vmem:[#allocation2] sm:$0xff]  ;;  %v57_v11 = vld [vmem:[#allocation5 + $0x30] sm:$0xff]  ;;  %p376_p3 = scmp.lt.s32.totalorder %s193_s12, %s193_s12 }
  0x29   :  { %275 = vmatprep.subr.bf16.mxu0 %v274_v3  ;;  %306 = vmatprep.subr.bf16.mxu1 %v274_v3  ;;  %v282_v8 = vpack.c.bf16 %v56_v7, %v55_v6  ;;  %v47_v10 = vld [vmem:[#allocation2 + $0x20] sm:$0xff]  ;;  %v58_v12 = vld [vmem:[#allocation5 + $0x38] sm:$0xff]  ;;  %v60_v15 = vld [vmem:[#allocation5 + $0x48] sm:$0xff] }
  0x2a   :  { %277 = vmatpush3.bf16.msra.mxu0 %v274_v3  ;;  %314 = vmatpush3.bf16.msra.mxu1 %v274_v3  ;;  %v286_v13 = vpack.c.bf16 %v58_v12, %v57_v11  ;;  %v59_v14 = vld [vmem:[#allocation5 + $0x40] sm:$0xff]  ;;  %v61_v17 = vld [vmem:[#allocation5 + $0x50] sm:$0xff]  ;;  %v62_v18 = vld [vmem:[#allocation5 + $0x58] sm:$0xff] }
  0x2b   :  { %279 = vmatprep.subr.bf16.mxu0 %v278_v5  ;;  %307 = vmatprep.subr.bf16.mxu1 %v278_v5  ;;  %v290_v16 = vpack.c.bf16 %v60_v15, %v59_v14  ;;  %v294_v19 = vpack.c.bf16 %v62_v18, %v61_v17  ;;  %v63_v20 = vld [vmem:[#allocation5 + $0x60] sm:$0xff]  ;;  %v64_v21 = vld [vmem:[#allocation5 + $0x68] sm:$0xff]  ;;  %v65_v23 = vld [vmem:[#allocation5 + $0x70] sm:$0xff] }
  0x2c   :  { %262 = vmatprep.mubr.f32.mxu0 %v43_v9  ;;  %268 = vmatprep.mubr.f32.mxu1 %v47_v10  ;;  %v298_v22 = vpack.c.bf16 %v64_v21, %v63_v20  ;;  %v66_v24 = vld [vmem:[#allocation5 + $0x78] sm:$0xff]  ;;  %v44_v26 = vld [vmem:[#allocation2 + $0x8] sm:$0xff]  ;;  %v45_v28 = vld [vmem:[#allocation2 + $0x10] sm:$0xff] }
  0x2d   :  { %v302_v25 = vpack.c.bf16 %v66_v24, %v65_v23  ;;  %v48_v27 = vld [vmem:[#allocation2 + $0x28] sm:$0xff]  ;;  %v49_v29 = vld [vmem:[#allocation2 + $0x30] sm:$0xff]  ;;  %v46_v30 = vld [vmem:[#allocation2 + $0x18] sm:$0xff] }
  0x2e   :  { %281 = vmatpush3.bf16.msra.mxu0 %v278_v5  ;;  %315 = vmatpush3.bf16.msra.mxu1 %v278_v5  ;;  %v50_v31 = vld [vmem:[#allocation2 + $0x38] sm:$0xff]  ;;  %v205_v32 = vld [vmem:[%s474_s2] ss:$0 sm:$0xff]  ;;  %s371_s2 = scalar_lea.vmem %s193_s12, 1024 }
  0x2f   :  { %283 = vmatprep.subr.bf16.mxu0 %v282_v8  ;;  %308 = vmatprep.subr.bf16.mxu1 %v282_v8  ;;  %p372_p2 = scmp.ne.s32.totalorder %s193_s12, %s371_s2  ;;  %p377_p4 = scmp.lt.s32.totalorder %s371_s2, %s371_s2 }
  0x31   :  { %p378_p5 = por %p377_p4, %p376_p3 }
  0x32   :  { %285 = vmatpush3.bf16.msra.mxu0 %v282_v8  ;;  %316 = vmatpush3.bf16.msra.mxu1 %v282_v8 }
  0x33   :  { %287 = vmatprep.subr.bf16.mxu0 %v286_v13  ;;  %309 = vmatprep.subr.bf16.mxu1 %v286_v13  ;;  %p379_p6 = pnand %p378_p5, %p372_p2 }
  0x36   :  { %289 = vmatpush3.bf16.msra.mxu0 %v286_v13  ;;  %317 = vmatpush3.bf16.msra.mxu1 %v286_v13 }
  0x37   :  { %291 = vmatprep.subr.bf16.mxu0 %v290_v16  ;;  %310 = vmatprep.subr.bf16.mxu1 %v290_v16 }
  0x3a   :  { %293 = vmatpush3.bf16.msra.mxu0 %v290_v16  ;;  %318 = vmatpush3.bf16.msra.mxu1 %v290_v16 }
  0x3b   :  { %295 = vmatprep.subr.bf16.mxu0 %v294_v19  ;;  %311 = vmatprep.subr.bf16.mxu1 %v294_v19 }
  0x3e   :  { %297 = vmatpush3.bf16.msra.mxu0 %v294_v19  ;;  %319 = vmatpush3.bf16.msra.mxu1 %v294_v19 }
  0x3f   :  { %299 = vmatprep.subr.bf16.mxu0 %v298_v22  ;;  %312 = vmatprep.subr.bf16.mxu1 %v298_v22 }
  0x42   :  { %301 = vmatpush3.bf16.msra.mxu0 %v298_v22  ;;  %320 = vmatpush3.bf16.msra.mxu1 %v298_v22 }
  0x43   :  { %303 = vmatprep.subr.bf16.mxu0 %v302_v25  ;;  %313 = vmatprep.subr.bf16.mxu1 %v302_v25 }
  0x46   :  { %305 = vmatpush3.bf16.msra.mxu0 %v302_v25  ;;  %321 = vmatpush3.bf16.msra.mxu1 %v302_v25 }
  0x49   :  { %263 = vmatmul.mubr.f32.vlgmr.msra.gmra.mrb[0].mxu0 %v44_v26  ;;  %269 = vmatmul.mubr.f32.vlgmr.msra.gmra.mrb[0].mxu1 %v48_v27 }
  0x4a   :  { %265 = vmatprep.mubr.f32.mxu0 %v45_v28  ;;  %271 = vmatprep.mubr.f32.mxu1 %v49_v29 }
  0x4d   :  { %266 = vmatmul.mubr.f32.gmra.mrb[2].mxu0 %v46_v30  ;;  %272 = vmatmul.mubr.f32.gmra.mrb[2].mxu1 %v50_v31 }
 0x11c   :  { %v264_v33 = vpop.f32.mrb[0].mxu0  ;;  %v270_v34 = vpop.f32.mrb[0].mxu1 }
 0x11d   :  { %v146_v35 = vadd.f32 %v264_v33, %v205_v32  ;;  %v166_v36 = vadd.f32 %v270_v34, %v205_v32  ;;  %v140_v37 = vpop.f32.mrb[1].mxu0  ;;  %v160_v38 = vpop.f32.mrb[1].mxu1 }
 0x11e   :  { %v141_v39 = vadd.f32 %v205_v32, %v140_v37  ;;  %v161_v40 = vadd.f32 %v205_v32, %v160_v38 }
 0x11f   :  { %180 = vst [vmem:[#allocation7 + $0x8] sm:$0xff] %v146_v35  ;;  %184 = vst [vmem:[#allocation7 + $0x28] sm:$0xff] %v166_v36 }
 0x120   :  { %179 = vst [vmem:[#allocation7] sm:$0xff] %v141_v39  ;;  %183 = vst [vmem:[#allocation7 + $0x20] sm:$0xff] %v161_v40  ;;  %v267_v41 = vpop.f32.mrb[2].mxu0  ;;  %v273_v42 = vpop.f32.mrb[2].mxu1 }
 0x121   :  { %v156_v43 = vadd.f32 %v267_v41, %v205_v32  ;;  %v176_v44 = vadd.f32 %v273_v42, %v205_v32  ;;  %v150_v45 = vpop.f32.mrb[3].mxu0  ;;  %v170_v46 = vpop.f32.mrb[3].mxu1 }
 0x122   :  { %v151_v47 = vadd.f32 %v205_v32, %v150_v45  ;;  %v171_v48 = vadd.f32 %v205_v32, %v170_v46 }
 0x123   :  { %182 = vst [vmem:[#allocation7 + $0x18] sm:$0xff] %v156_v43  ;;  %186 = vst [vmem:[#allocation7 + $0x38] sm:$0xff] %v176_v44 }
 0x124   :  { %181 = vst [vmem:[#allocation7 + $0x10] sm:$0xff] %v151_v47  ;;  %185 = vst [vmem:[#allocation7 + $0x30] sm:$0xff] %v171_v48 }
 0x125   :  { %382 = shalt.err (!%p379_p6)
}
 0x126   :  { %s383_s15 = scalar_lea.hbm %s475_s3, 1024 }
 0x127   :  { %p384_p7 = scmp.ne.s32.totalorder %s475_s3, %s383_s15  ;;  %p387_p8 = scmp.lt.u32.totalorder %s383_s15, %s475_s3 }
 0x129   :  { %p389_p9 = pnand %p387_p8, %p384_p7 }
 0x12b   :  { %392 = shalt.err (!%p389_p9)
}
 0x12c   :  { %198 = dma.vmem_to_hbm [thread:$0]  %s193_s12, 1024, %s475_s3, [#allocation4], %s400_s22, %s400_s22, %s401_s23  }
 0x12d   :  { %397 = dma.done.wait [#allocation4], 1024  }
 0x12e   :  { %398 = vsyncadd [#allocation4], 4294966272 }
 0x12f   :  { %202 = vsyncpa [#allocation3], 1 }
 0x130   :  { %203 = vsyncpa [#allocation6], 1 }
 0x131   :  { %204 = vsyncpa [#allocation4], 1 }

</bundles_post_ra>
